<compile_context>
chip_gen: v7x
topology: tpu7x:2x2x1
jax: 0.10.0
libtpu: 0.0.40
codegen_flags: <defaults>
</compile_context>

<pallas_src>
import jax
import jax.numpy as jnp
from jax.experimental import pallas as pl
from jax.experimental.pallas import tpu as pltpu


def _se_kernel(x_ref, w1t_ref, w2t_ref, o_ref):
    # x_ref / o_ref: (NB, C, HW) block — NCHW-native: HW in lanes, C in sublanes.
    hw = x_ref.shape[-1]

    # Squeeze: AdaptiveAvgPool2d(1) == mean over spatial positions
    # (lane/XLU reduction), accumulated in f32.
    pooled = jnp.sum(x_ref[...].astype(jnp.float32), axis=-1) * (1.0 / hw)  # (NB, C)

    # Excite: fc1 (1x1 conv, no bias) + ReLU, fc2 + sigmoid — tiny MXU matmuls.
    h = jnp.dot(pooled, w1t_ref[...], preferred_element_type=jnp.float32)   # (NB, Cr)
    h = jnp.maximum(h, 0.0)
    z = jnp.dot(h, w2t_ref[...], preferred_element_type=jnp.float32)        # (NB, C)
    s = jax.nn.sigmoid(z).astype(o_ref.dtype)                               # EUP exp/recip

    # Re-scale in the input dtype; re-read x_ref so the f32 pooling temporary
    # is not kept live across the fc/sigmoid section.
    o_ref[...] = x_ref[...] * s[:, :, None]


def _vmem_capacity_bytes():
    try:
        info = pltpu.get_tpu_info()
        cap = getattr(info, "vmem_capacity_bytes", None)
        if cap:
            return int(cap)
    except Exception:
        pass
    return 64 * 1024 * 1024  # conservative fallback (v7x per-TC VMEM)


def _num_tensorcores_per_chip():
    try:
        kind = jax.devices()[0].device_kind.lower()
    except Exception:
        return 1
    return 2 if ("v7" in kind or "7x" in kind) else 1


def _pick_nb(n, c, hw, itemsize, block_budget, num_tc):
    """Largest divisor of n whose blocks fit the VMEM budget; on dual-TC chips
    prefer a divisor giving a step count that is a multiple of the core count."""
    # Per batch element: input + output blocks, each double-buffered by the
    # auto-pipeline, plus the transient f32 copy made for the pooled sum.
    per_n = 4 * c * hw * itemsize + c * hw * 4
    nb_max = max(1, block_budget // per_n)
    cands = [d for d in range(min(n, nb_max), 0, -1) if n % d == 0]
    if num_tc > 1:
        for d in cands:
            if (n // d) % num_tc == 0:
                return d
    return cands[0]


def se_module(x_nchw, w1, w2):
    """SEModule forward (matches the PyTorch module).

    x_nchw: (N, C, H, W)
    w1:     (C // reduction, C)  -- fc1 weight (1x1 conv, kernel dims squeezed)
    w2:     (C, C // reduction)  -- fc2 weight (1x1 conv, kernel dims squeezed)
    returns (N, C, H, W), same dtype as x
    """
    N, C, H, W = x_nchw.shape
    Cr = w1.shape[0]
    HW = H * W
    x_itemsize = jnp.dtype(x_nchw.dtype).itemsize
    w_itemsize = jnp.dtype(w1.dtype).itemsize

    # NCHW-native: collapsing (H, W) -> HW is a free contiguous reshape, so the
    # kernel performs exactly one HBM read + one HBM write of x (no transposes).
    x_flat = x_nchw.reshape(N, C, HW)
    w1_t = jnp.transpose(w1)  # (C, Cr) — tiny, negligible traffic
    w2_t = jnp.transpose(w2)  # (Cr, C)

    vmem_cap = _vmem_capacity_bytes()
    num_tc = _num_tensorcores_per_chip()
    block_budget = min(vmem_cap // 4, 32 * 1024 * 1024)   # ~16 MiB on v7x, 32 MiB on v5e/v6e
    vmem_limit = min(vmem_cap // 2, 64 * 1024 * 1024)     # ~32 MiB on v7x, 64 MiB on v5e/v6e

    NB = _pick_nb(N, C, HW, x_itemsize, block_budget, num_tc)
    steps = N // NB
    # TODO(synk): small-N / huge-slab fallback — a two-pass (pool+excite, then
    # rescale) scheme tiled over HW would let v7x's second TensorCore help when
    # steps == 1 or a single (1, C, HW) slab exceeds the block budget; not
    # needed for SE-ResNet/arcfacenet shapes (per-image slabs are <= ~16 MiB).

    core_parallel = getattr(pltpu, "CORE_PARALLEL", None)
    if num_tc > 1 and steps % num_tc == 0 and core_parallel is not None:
        dim_sem = (core_parallel,)
    else:
        dim_sem = ("parallel",)

    cost = pl.CostEstimate(
        flops=2 * N * C * HW + 4 * N * C * Cr,
        transcendentals=N * C,
        bytes_accessed=2 * N * C * HW * x_itemsize + 2 * C * Cr * w_itemsize,
    )

    out_flat = pl.pallas_call(
        _se_kernel,
        out_shape=jax.ShapeDtypeStruct((N, C, HW), x_nchw.dtype),
        grid_spec=pltpu.PrefetchScalarGridSpec(
            num_scalar_prefetch=0,
            grid=(steps,),
            in_specs=[
                pl.BlockSpec((NB, C, HW), lambda i: (i, 0, 0)),
                # Loop-invariant weights (constant index_map): fetched once.
                pl.BlockSpec((C, Cr), lambda i: (0, 0)),
                pl.BlockSpec((Cr, C), lambda i: (0, 0)),
            ],
            out_specs=pl.BlockSpec((NB, C, HW), lambda i: (i, 0, 0)),
        ),
        compiler_params=pltpu.CompilerParams(
            dimension_semantics=dim_sem,
            vmem_limit_bytes=vmem_limit,
        ),
        cost_estimate=cost,
    )(x_flat, w1_t, w2_t)

    return out_flat.reshape(N, C, H, W)


def _reference(x, w1, w2):
    # Pure-JAX reference matching the PyTorch forward.
    pooled = jnp.mean(x, axis=(2, 3), keepdims=True)             # (N, C, 1, 1)
    h = jnp.einsum("rc,nchw->nrhw", w1, pooled)                  # fc1 (1x1 conv)
    h = jnp.maximum(h, 0.0)
    z = jnp.einsum("cr,nrhw->nchw", w2, h)                       # fc2 (1x1 conv)
    return x * jax.nn.sigmoid(z)


if __name__ == "__main__":
    key = jax.random.PRNGKey(0)
    N, C, H, W = 2, 8, 16, 16
    reduction = 4
    Cr = C // reduction

    kx, k1, k2 = jax.random.split(key, 3)
    x = jax.random.normal(kx, (N, C, H, W), dtype=jnp.float32)
    # Conv2d weights are (Cout, Cin, 1, 1); squeeze the 1x1 kernel dims.
    w1 = (jax.random.normal(k1, (Cr, C, 1, 1), dtype=jnp.float32) * 0.1)[..., 0, 0]
    w2 = (jax.random.normal(k2, (C, Cr, 1, 1), dtype=jnp.float32) * 0.1)[..., 0, 0]

    out = se_module(x, w1, w2)
    jax.block_until_ready(out)

    ref = _reference(x, w1, w2)
    assert out.shape == ref.shape, "shape mismatch vs reference"
    assert jnp.allclose(out, ref, atol=1e-5, rtol=1e-5), "mismatch vs reference"

    print("KERNEL_OK")
</pallas_src>

<mosaic_0001>
module attributes {stable_mosaic.version = 11 : i64} {
  func.func @_se_kernel(%arg0: i32, %arg1: memref<2x8x256xf32, #tpu.memory_space<vmem>>, %arg2: memref<8x2xf32, #tpu.memory_space<vmem>>, %arg3: memref<2x8xf32, #tpu.memory_space<vmem>>, %arg4: memref<2x8x256xf32, #tpu.memory_space<vmem>>) attributes {dimension_semantics = [#tpu.dimension_semantics<parallel>], iteration_bounds = array<i64: 1>, scalar_prefetch = 0 : i64, scratch_operands = 0 : i64, tpu.core_type = #tpu.core_type<tc>, window_params = [{transform_indices = @transform_0, window_bounds = array<i64: 2, 8, 256>}, {pipeline_mode = #tpu.pipeline_mode<synchronous>, transform_indices = @transform_1, window_bounds = array<i64: 8, 2>}, {pipeline_mode = #tpu.pipeline_mode<synchronous>, transform_indices = @transform_2, window_bounds = array<i64: 2, 8>}, {transform_indices = @transform_3, window_bounds = array<i64: 2, 8, 256>}]} {
    %c0 = arith.constant 0 : index
    %c0_0 = arith.constant 0 : index
    %c0_1 = arith.constant 0 : index
    %0 = vector.load %arg1[%c0, %c0_0, %c0_1] : memref<2x8x256xf32, #tpu.memory_space<vmem>>, vector<2x8x256xf32>
    %cst = arith.constant dense<0.000000e+00> : vector<2x8xf32>
    %1 = vector.multi_reduction <add>, %0, %cst [2] : vector<2x8x256xf32> to vector<2x8xf32>
    %cst_2 = arith.constant 3.906250e-03 : f32
    %2 = vector.broadcast %cst_2 : f32 to vector<2x8xf32>
    %3 = arith.mulf %1, %2 : vector<2x8xf32>
    %c0_3 = arith.constant 0 : index
    %c0_4 = arith.constant 0 : index
    %4 = vector.load %arg2[%c0_3, %c0_4] : memref<8x2xf32, #tpu.memory_space<vmem>>, vector<8x2xf32>
    %cst_5 = arith.constant dense<0.000000e+00> : vector<2x2xf32>
    %5 = tpu.matmul %3, %4, %cst_5 {dimension_numbers = #tpu.dot_dimension_numbers<[1], [0], [0], [1], [0, 0, 1, 1], [], []>} : vector<2x8xf32>, vector<8x2xf32>, vector<2x2xf32> -> vector<2x2xf32>
    %cst_6 = arith.constant 0.000000e+00 : f32
    %6 = vector.broadcast %cst_6 : f32 to vector<2x2xf32>
    %7 = arith.maximumf %5, %6 : vector<2x2xf32>
    %c0_7 = arith.constant 0 : index
    %c0_8 = arith.constant 0 : index
    %8 = vector.load %arg3[%c0_7, %c0_8] : memref<2x8xf32, #tpu.memory_space<vmem>>, vector<2x8xf32>
    %cst_9 = arith.constant dense<0.000000e+00> : vector<2x8xf32>
    %9 = tpu.matmul %7, %8, %cst_9 {dimension_numbers = #tpu.dot_dimension_numbers<[1], [0], [0], [1], [0, 0, 1, 1], [], []>} : vector<2x2xf32>, vector<2x8xf32>, vector<2x8xf32> -> vector<2x8xf32>
    %10 = arith.negf %9 : vector<2x8xf32>
    %11 = math.exp %10 : vector<2x8xf32>
    %cst_10 = arith.constant 1.000000e+00 : f32
    %12 = vector.broadcast %cst_10 : f32 to vector<2x8xf32>
    %13 = arith.addf %12, %11 : vector<2x8xf32>
    %14 = arith.divf %12, %13 : vector<2x8xf32>
    %c0_11 = arith.constant 0 : index
    %c0_12 = arith.constant 0 : index
    %c0_13 = arith.constant 0 : index
    %15 = vector.load %arg1[%c0_11, %c0_12, %c0_13] : memref<2x8x256xf32, #tpu.memory_space<vmem>>, vector<2x8x256xf32>
    %16 = vector.shape_cast %14 : vector<2x8xf32> to vector<2x8x1xf32>
    %17 = vector.broadcast %16 : vector<2x8x1xf32> to vector<2x8x256xf32>
    %18 = arith.mulf %15, %17 : vector<2x8x256xf32>
    %c0_14 = arith.constant 0 : index
    %c0_15 = arith.constant 0 : index
    %c0_16 = arith.constant 0 : index
    %19 = vector.load %arg4[%c0_14, %c0_15, %c0_16] : memref<2x8x256xf32, #tpu.memory_space<vmem>>, vector<2x8x256xf32>
    tpu.vector_store %arg4[%c0_14, %c0_15, %c0_16], %18 {strides = array<i32>} : memref<2x8x256xf32, #tpu.memory_space<vmem>>, vector<2x8x256xf32>,
    return
  }
  func.func @transform_0(%arg0: i32) -> (i32, i32, i32) {
    %c0_i32 = arith.constant 0 : i32
    %c0_i32_0 = arith.constant 0 : i32
    %c0_i32_1 = arith.constant 0 : i32
    return %arg0, %c0_i32, %c0_i32_0 : i32, i32, i32
  }
  func.func @transform_1(%arg0: i32) -> (i32, i32) {
    %c0_i32 = arith.constant 0 : i32
    %c0_i32_0 = arith.constant 0 : i32
    %c0_i32_1 = arith.constant 0 : i32
    return %c0_i32, %c0_i32_0 : i32, i32
  }
  func.func @transform_2(%arg0: i32) -> (i32, i32) {
    %c0_i32 = arith.constant 0 : i32
    %c0_i32_0 = arith.constant 0 : i32
    %c0_i32_1 = arith.constant 0 : i32
    return %c0_i32, %c0_i32_0 : i32, i32
  }
  func.func @transform_3(%arg0: i32) -> (i32, i32, i32) {
    %c0_i32 = arith.constant 0 : i32
    %c0_i32_0 = arith.constant 0 : i32
    %c0_i32_1 = arith.constant 0 : i32
    return %arg0, %c0_i32, %c0_i32_0 : i32, i32, i32
  }
}

</mosaic_0001>

<bundles_post_ra>
// kernel: tpu_custom_call.1
= control target key start
LH: loop header
LB: loop body
LE: loop exit
PB: predicated region body
PF: predicated region fallthrough
CT: control target
= control target key end

     0   :  { %8 = vsyncpa [#allocation3], 0  ;;  %s392_s0 = inlined_call_operand.hbm [shape: f32[2,8,256], index: 0, kind: input, shape index: {}]   ;;  %s393_s1 = inlined_call_operand.vmem [shape: f32[8,2], index: 1, kind: input, shape index: {}]   ;;  %s394_s2 = inlined_call_operand.vmem [shape: f32[2,8], index: 2, kind: input, shape index: {}]   ;;  %s395_s3 = inlined_call_operand.hbm [shape: f32[2,8,256], index: 3, kind: output, shape index: {}]  }
   0x1   :  { %9 = vsyncpa [#allocation4], 0  ;;  %s330_s12 = smov [#allocation2]   ;;  %s282_s16 = scalar_lea.hbm %s392_s0, 512 }
   0x2   :  { %s15_s13 = sshll.u32 %s330_s12, 4  ;;  %p283_p0 = scmp.ne.s32.totalorder %s392_s0, %s282_s16  ;;  %s16_s13 = int_to_ptr.vmem [resolvable:$true] %s15_s13 }
   0x3   :  { %p286_p1 = scmp.lt.u32.totalorder %s282_s16, %s392_s0 }
   0x5   :  { %p288_p2 = pnand %p286_p1, %p283_p0 }
   0x7   :  { %291 = shalt.err (!%p288_p2)
}
   0x8   :  { %s292_s21 = scalar_lea.vmem %s16_s13, 512  ;;  %p297_p4 = scmp.lt.s32.totalorder %s16_s13, %s16_s13 }
   0x9   :  { %p293_p3 = scmp.ne.s32.totalorder %s16_s13, %s292_s21  ;;  %p298_p5 = scmp.lt.s32.totalorder %s292_s21, %s292_s21 }
   0xb   :  { %p299_p6 = por %p298_p5, %p297_p4 }
   0xd   :  { %p300_p7 = pnand %p299_p6, %p293_p3 }
   0xf   :  { %303 = shalt.err (!%p300_p7)
}
  0x10   :  { %s331_s22 = smov 256   ;;  %s332_s23 = smov 16  }
  0x11   :  { %21 = dma.hbm_to_vmem [thread:$0]  %s392_s0, 512, %s16_s13, [#allocation3], %s331_s22, %s331_s22, %s332_s23  }
  0x12   :  { %326 = dma.done.wait [#allocation3], 512  }
  0x13   :  { %327 = vsyncadd [#allocation3], 4294966784  ;;  %v29_v0 = vld [vmem:[#allocation2] sm:$0xff]  ;;  %v30_v1 = vld [vmem:[#allocation2 + $0x8] sm:$0xff]  ;;  %v333_v7 = vmov 0.0   ;;  %vm334_vm0 = vmmov 0   ;;  %v44_v8 = vlaneseq }
  0x14   :  { %v31_v2 = vld [vmem:[#allocation2 + $0x10] sm:$0xff]  ;;  %v33_v3 = vadd.f32 %v30_v1, %v29_v0  ;;  %v32_v4 = vld [vmem:[#allocation2 + $0x18] sm:$0xff]  ;;  %v41_v6 = vld [vmem:[%s393_s1] sm:$0xff]  ;;  %262 = vmatprep.subr.mxu0 %v333_v7  ;;  %264 = vmatprep.mubr.msk.f32.mxu0 %vm334_vm0, %v333_v7  ;;  %vm54_vm1 = vcmask 1041409   ;;  %vm56_vm2 = vcmask 64512   ;;  %vm135_vm3 = vcmask 1041408  }
  0x15   :  { %v36_v5 = vadd.f32 %v32_v4, %v31_v2  ;;  %263 = vmatpush3.msra.mxu0 %v41_v6  ;;  %267 = vmatprep.subr.mxu1 %v333_v7  ;;  %v45_v9 = vand.u32 127, %v44_v8  ;;  %v47_v10 = vshrl.u32 %v44_v8, 7  ;;  %v130_v19 = vld [vmem:[%s394_s2] sm:$0x3]  ;;  %vm131_vm4 = vcmask 15360   ;;  %s335_s2 = smov [#allocation5]  }
  0x16   :  { %34 = vadd.xlane.f32.xlu0 %v33_v3  ;;  %269 = vmatprep.mubr.msk.f32.mxu1 %vm334_vm0, %v333_v7  ;;  %s242_s28 = sshll.u32 %s335_s2, 4  ;;  %s243_s28 = int_to_ptr.vmem [resolvable:$true] %s242_s28 }
  0x17   :  { %v48_v12 = vsub.s32 %v45_v9, %v47_v10  ;;  %268 = vmatpush3.msk.msra.mxu1 %vm135_vm3, %v130_v19  ;;  %v217_v28 = vsub.s32 0, %v47_v10  ;;  %v224_v31 = vsub.s32 1, %v47_v10  ;;  %s304_s29 = scalar_lea.vmem %s243_s28, 512  ;;  %p309_p9 = scmp.lt.s32.totalorder %s243_s28, %s243_s28 }
  0x18   :  { %p305_p8 = scmp.ne.s32.totalorder %s243_s28, %s304_s29  ;;  %p310_p10 = scmp.lt.s32.totalorder %s304_s29, %s304_s29 }
  0x1a   :  { %37 = vadd.xlane.f32.xlu0 %v36_v5  ;;  %p311_p11 = por %p310_p10, %p309_p9 }
  0x1c   :  { %p312_p12 = pnand %p311_p11, %p305_p8 }
  0xa3   :  { %v35_v11 = vpop.xlane.xlu0 %34 }
  0xa4   :  { %v39_v13 = vmul.f32 0.00390625, %v35_v11 }
  0xa6   :  { %v49_v16 = vrot.slane %v39_v13, %v48_v12 }
  0xa7   :  { %v38_v14 = vpop.xlane.xlu0 %37 }
  0xa8   :  { %v40_v15 = vmul.f32 0.00390625, %v38_v14 }
  0xaa   :  { %v53_v17 = vrot.slane %v40_v15, %v48_v12 }
  0xac   :  { %v55_v18 = vsel %vm54_vm1, %v53_v17, %v49_v16 }
  0xad   :  { %265 = vmatmul.mubr.msk.f32.vlgmr.msra.gmra.mrb[0].mxu0 %vm56_vm2, %v55_v18 }
 0x180   :  { %v125_v20 = vpop.f32.mrb[0].mxu0 }
 0x181   :  { %v129_v21 = vmax.f32 %v125_v20, 0.0  ;;  %v266_v22 = vpop.f32.mrb[1].mxu0 }
 0x183   :  { %270 = vmatmul.mubr.msk.f32.vlgmr.msra.gmra.mrb[0].mxu1 %vm131_vm4, %v129_v21 }
 0x256   :  { %v205_v23 = vpop.f32.mrb[0].mxu1 }
 0x257   :  { %v257_v24 = vmul.f32 -1.442695, %v205_v23  ;;  %v271_v25 = vpop.f32.mrb[1].mxu1 }
 0x259   :  { %278 = vpow2.f32 %v257_v24 }
 0x263   :  { %v279_v26 = vpop.eup %278 }
 0x264   :  { %v212_v27 = vadd.f32 1.0, %v279_v26 }
 0x266   :  { %280 = vrcp.f32 %v212_v27 }
 0x270   :  { %v281_v29 = vpop.eup %280 }
 0x271   :  { %v218_v30 = vrot.slane %v281_v29, %v217_v28  ;;  %v225_v32 = vrot.slane %v281_v29, %v224_v31 }
 0x273   :  { %220 = vbcast.lane.b32.xlu1 %v218_v30, 256 }
 0x277   :  { %227 = vbcast.lane.b32.xlu1 %v225_v32, 256 }
 0x2e5   :  { %v221_v33 = vpop.permute.xlu1 %220 }
 0x2e6   :  { %v229_v34 = vmul.f32 %v221_v33, %v29_v0  ;;  %v230_v35 = vmul.f32 %v221_v33, %v30_v1 }
 0x2e8   :  { %233 = vst [vmem:[#allocation5] sm:$0xff] %v229_v34  ;;  %234 = vst [vmem:[#allocation5 + $0x8] sm:$0xff] %v230_v35 }
 0x2e9   :  { %v228_v36 = vpop.permute.xlu1 %227 }
 0x2ea   :  { %v231_v37 = vmul.f32 %v228_v36, %v31_v2  ;;  %v232_v38 = vmul.f32 %v228_v36, %v32_v4 }
 0x2ec   :  { %235 = vst [vmem:[#allocation5 + $0x10] sm:$0xff] %v231_v37  ;;  %236 = vst [vmem:[#allocation5 + $0x18] sm:$0xff] %v232_v38 }
 0x2ed   :  { %315 = shalt.err (!%p312_p12)
}
 0x2ee   :  { %s316_s5 = scalar_lea.hbm %s395_s3, 512 }
 0x2ef   :  { %p317_p13 = scmp.ne.s32.totalorder %s395_s3, %s316_s5  ;;  %p320_p0 = scmp.lt.u32.totalorder %s316_s5, %s395_s3 }
 0x2f1   :  { %p322_p1 = pnand %p320_p0, %p317_p13 }
 0x2f3   :  { %325 = shalt.err (!%p322_p1)
}
 0x2f4   :  { %248 = dma.vmem_to_hbm [thread:$0]  %s243_s28, 512, %s395_s3, [#allocation4], %s331_s22, %s331_s22, %s332_s23  }
 0x2f5   :  { %328 = dma.done.wait [#allocation4], 512  }
 0x2f6   :  { %329 = vsyncadd [#allocation4], 4294966784 }
 0x2f7   :  { %252 = vsyncpa [#allocation3], 1 }
 0x2f8   :  { %253 = vsyncpa [#allocation4], 1 }

</bundles_post_ra>
